<compile_context>
chip_gen: v6e
topology: v6e:2x2x1
jax: 0.10.0
libtpu: 0.0.40
codegen_flags: <defaults>
</compile_context>

<pallas_src>
import functools

import jax
import jax.numpy as jnp
from jax.experimental import pallas as pl
from jax.experimental.pallas import tpu as pltpu


def make_mel_weights(height: int, min_value: float = 0.3) -> jnp.ndarray:
    """Deterministic re-implementation of the module's __init__ weights."""
    f = (jnp.arange(height, dtype=jnp.float32)[:, None] + 20.0) * 20000.0
    mel = 1127.01048 * jnp.log(f / 700.0 + 1.0)
    n_mel = 1.0 - mel / jnp.max(mel)
    w = (n_mel + min_value) / jnp.max(n_mel + min_value)
    return w  # (height, 1), float32


def _loss_kernel(x_ref, t_ref, w_ref, mu_ref, lv_ref,
                 total_ref, recon_ref, acc_ref, *,
                 n_rows, tile_rows, n_elems, n_batch, n_latent, beta):
    i = pl.program_id(0)

    # ---- init the running sum on the first grid step -----------------------
    @pl.when(i == 0)
    def _():
        acc_ref[0] = jnp.float32(0.0)

    # ---- streamed weighted squared error (every grid step) -----------------
    x = x_ref[...].astype(jnp.float32)            # (tile_rows, H*W)
    t = t_ref[...].astype(jnp.float32)
    diff = x - t
    if n_rows % tile_rows != 0:                   # mask the partial last tile
        row_ids = (jax.lax.broadcasted_iota(jnp.int32, (tile_rows, 1), 0)
                   + i * tile_rows)
        diff = jnp.where(row_ids < n_rows, diff, 0.0)
    wsq = diff * diff * w_ref[...]                # (1, H*W) broadcasts over rows
    acc_ref[0] += jnp.sum(wsq)

    # ---- finalize: mean, KL term, beta combine (last step only) ------------
    @pl.when(i == pl.num_programs(0) - 1)
    def _():
        recon = acc_ref[0] / jnp.float32(n_elems)            # torch.mean(...)
        lv = jnp.clip(lv_ref[...].astype(jnp.float32) + 1e-6, -10.0, 10.0)
        mu = mu_ref[...].astype(jnp.float32)
        kl_terms = 1.0 + lv - mu * mu - jnp.exp(lv)          # (N, D)
        # -0.5 * sum(dim=1).mean()  ==  -0.5 * sum_all / N
        kl = -0.5 * jnp.sum(kl_terms) / jnp.float32(n_latent)
        kl = kl / jnp.float32(n_batch)                       # kl_loss /= input.size(0)
        kl = jnp.maximum(kl, jnp.float32(1e-6))              # clamp(min=1e-6)
        recon_ref[0, 0] = recon
        total_ref[0, 0] = recon + jnp.float32(beta) * kl


def mel_weighted_mse_loss_vae(inp, target, mu, logvar, weights, beta=0.1,
                              *, max_tile_bytes=2 * 1024 * 1024):
    """Returns (total_loss, recon_loss) as float32 scalars."""
    N, C, H, W = inp.shape
    R, HW = N * C, H * W

    # Lane-dense layout, native dtype (no f32 copies of the big tensors).
    x = inp.reshape(R, HW)
    t = target.reshape(R, HW)
    # Flatten the (H, 1) mel weights once into a single resident (1, H*W) row
    # (tiny vs. the data; DMA'd once and kept in VMEM across the grid).
    w_row = jnp.broadcast_to(weights.reshape(H, 1).astype(jnp.float32),
                             (H, W)).reshape(1, HW)

    # Row-tile size: ~max_tile_bytes per pipeline buffer; 2 inputs x 2 buffers
    # stays well inside scoped VMEM on v5e/v6e/v7x.
    itemsize = jnp.dtype(inp.dtype).itemsize
    rows_fit = max(1, max_tile_bytes // (HW * itemsize))
    if rows_fit >= R:
        tile_rows = R
    else:
        tile_rows = min(R, max(8, (rows_fit // 8) * 8))   # sublane multiple of 8
    num_tiles = pl.cdiv(R, tile_rows)

    kernel = functools.partial(
        _loss_kernel,
        n_rows=R,
        tile_rows=tile_rows,
        n_elems=R * HW,
        n_batch=N,
        n_latent=mu.shape[0],
        beta=float(beta),
    )

    # Note: on v7x both TensorCores could be engaged with a leading "parallel"
    # axis and per-core partial sums; kept single "arbitrary" axis for clarity.
    total, recon = pl.pallas_call(
        kernel,
        out_shape=(jax.ShapeDtypeStruct((1, 1), jnp.float32),
                   jax.ShapeDtypeStruct((1, 1), jnp.float32)),
        grid=(num_tiles,),
        in_specs=[
            pl.BlockSpec((tile_rows, HW), lambda i: (i, 0)),   # x tile
            pl.BlockSpec((tile_rows, HW), lambda i: (i, 0)),   # target tile
            pl.BlockSpec((1, HW), lambda i: (0, 0)),           # mel weights (resident)
            pl.BlockSpec(mu.shape, lambda i: (0, 0)),          # mu (resident)
            pl.BlockSpec(logvar.shape, lambda i: (0, 0)),      # logvar (resident)
        ],
        out_specs=(pl.BlockSpec(memory_space=pltpu.MemorySpace.SMEM),
                   pl.BlockSpec(memory_space=pltpu.MemorySpace.SMEM)),
        scratch_shapes=[pltpu.SMEM((1,), jnp.float32)],
        compiler_params=pltpu.CompilerParams(
            dimension_semantics=("arbitrary",)),
    )(x, t, w_row, mu, logvar)

    return total[0, 0], recon[0, 0]


def _reference(inp, target, mu, logvar, weights, beta=0.1):
    """Pure-JAX reference mirroring the PyTorch forward."""
    x = inp.astype(jnp.float32)
    t = target.astype(jnp.float32)
    lv = jnp.clip(logvar.astype(jnp.float32) + 1e-6, -10.0, 10.0)
    recon = jnp.mean((x - t) ** 2 * weights)      # (H,1) broadcasts over W/C/N
    kl = -0.5 * jnp.mean(
        jnp.sum(1.0 + lv - mu.astype(jnp.float32) ** 2 - jnp.exp(lv), axis=1))
    kl = kl / inp.shape[0]
    kl = jnp.maximum(kl, 1e-6)
    return recon + kl * beta, recon


if __name__ == "__main__":
    BETA = 0.1
    key = jax.random.PRNGKey(0)

    # --- test 1: single-tile path (batch=2, 1 channel, mel height=64, 32 frames)
    N, C, H, W, D = 2, 1, 64, 32, 32
    k1, k2, k3, k4, key = jax.random.split(key, 5)
    inp = jax.random.normal(k1, (N, C, H, W), dtype=jnp.float32)
    target = jax.random.normal(k2, (N, C, H, W), dtype=jnp.float32)
    mu = jax.random.normal(k3, (N, D), dtype=jnp.float32)
    logvar = jax.random.normal(k4, (N, D), dtype=jnp.float32)
    weights = make_mel_weights(H, min_value=0.3)

    total, recon = mel_weighted_mse_loss_vae(inp, target, mu, logvar, weights, BETA)
    total = jax.block_until_ready(total)
    recon = jax.block_until_ready(recon)
    ref_total, ref_recon = _reference(inp, target, mu, logvar, weights, BETA)
    assert jnp.allclose(total, ref_total, rtol=1e-5, atol=1e-5), (total, ref_total)
    assert jnp.allclose(recon, ref_recon, rtol=1e-5, atol=1e-5), (recon, ref_recon)

    # --- test 2: multi-step grid with a partial (masked) last row tile -------
    N, C, H, W, D = 3, 4, 64, 16, 48           # N*C = 12 rows -> 8-row tiles, 2 steps
    k1, k2, k3, k4, key = jax.random.split(key, 5)
    inp = jax.random.normal(k1, (N, C, H, W), dtype=jnp.float32)
    target = jax.random.normal(k2, (N, C, H, W), dtype=jnp.float32)
    mu = jax.random.normal(k3, (N, D), dtype=jnp.float32)
    logvar = jax.random.normal(k4, (N, D), dtype=jnp.float32)
    weights = make_mel_weights(H, min_value=0.3)

    total, recon = mel_weighted_mse_loss_vae(
        inp, target, mu, logvar, weights, BETA,
        max_tile_bytes=8 * H * W * 4)          # force small tiles to exercise the grid
    total = jax.block_until_ready(total)
    recon = jax.block_until_ready(recon)
    ref_total, ref_recon = _reference(inp, target, mu, logvar, weights, BETA)
    assert jnp.allclose(total, ref_total, rtol=1e-5, atol=1e-5), (total, ref_total)
    assert jnp.allclose(recon, ref_recon, rtol=1e-5, atol=1e-5), (recon, ref_recon)

    print("KERNEL_OK")
</pallas_src>

<mosaic_0001>
module attributes {stable_mosaic.version = 11 : i64} {
  func.func @_loss_kernel(%arg0: i32, %arg1: memref<2x2048xf32, #tpu.memory_space<vmem>>, %arg2: memref<2x2048xf32, #tpu.memory_space<vmem>>, %arg3: memref<1x2048xf32, #tpu.memory_space<vmem>>, %arg4: memref<2x32xf32, #tpu.memory_space<vmem>>, %arg5: memref<2x32xf32, #tpu.memory_space<vmem>>, %arg6: memref<1x1xf32, #tpu.memory_space<smem>>, %arg7: memref<1x1xf32, #tpu.memory_space<smem>>, %arg8: memref<1xf32, #tpu.memory_space<smem>>) attributes {dimension_semantics = [#tpu.dimension_semantics<arbitrary>], iteration_bounds = array<i64: 1>, scalar_prefetch = 0 : i64, scratch_operands = 1 : i64, tpu.core_type = #tpu.core_type<tc>, window_params = [{transform_indices = @transform_0, window_bounds = array<i64: 2, 2048>}, {transform_indices = @transform_1, window_bounds = array<i64: 2, 2048>}, {pipeline_mode = #tpu.pipeline_mode<synchronous>, transform_indices = @transform_2, window_bounds = array<i64: 1, 2048>}, {pipeline_mode = #tpu.pipeline_mode<synchronous>, transform_indices = @transform_3, window_bounds = array<i64: 2, 32>}, {pipeline_mode = #tpu.pipeline_mode<synchronous>, transform_indices = @transform_4, window_bounds = array<i64: 2, 32>}, {transform_indices = @transform_5, window_bounds = array<i64: 1, 1>}, {transform_indices = @transform_6, window_bounds = array<i64: 1, 1>}]} {
    %c0_i32 = arith.constant 0 : i32
    %0 = arith.cmpi eq, %arg0, %c0_i32 : i32
    %1 = arith.extui %0 : i1 to i32
    %c0_i32_0 = arith.constant 0 : i32
    %2 = arith.cmpi ne, %1, %c0_i32_0 : i32
    scf.if %2 {
      %cst_10 = arith.constant 0.000000e+00 : f32
      %c0_11 = arith.constant 0 : index
      %20 = memref.load %arg8[%c0_11] : memref<1xf32, #tpu.memory_space<smem>>
      memref.store %cst_10, %arg8[%c0_11] : memref<1xf32, #tpu.memory_space<smem>>
    } else {
    }
    %c0 = arith.constant 0 : index
    %c0_1 = arith.constant 0 : index
    %3 = vector.load %arg1[%c0, %c0_1] : memref<2x2048xf32, #tpu.memory_space<vmem>>, vector<2x2048xf32>
    %c0_2 = arith.constant 0 : index
    %c0_3 = arith.constant 0 : index
    %4 = vector.load %arg2[%c0_2, %c0_3] : memref<2x2048xf32, #tpu.memory_space<vmem>>, vector<2x2048xf32>
    %5 = arith.subf %3, %4 : vector<2x2048xf32>
    %6 = arith.mulf %5, %5 : vector<2x2048xf32>
    %c0_4 = arith.constant 0 : index
    %c0_5 = arith.constant 0 : index
    %7 = vector.load %arg3[%c0_4, %c0_5] : memref<1x2048xf32, #tpu.memory_space<vmem>>, vector<1x2048xf32>
    %8 = vector.broadcast %7 : vector<1x2048xf32> to vector<2x2048xf32>
    %9 = arith.mulf %6, %8 : vector<2x2048xf32>
    %c0_6 = arith.constant 0 : index
    %10 = memref.load %arg8[%c0_6] : memref<1xf32, #tpu.memory_space<smem>>
    %11 = vector.shape_cast %9 : vector<2x2048xf32> to vector<1x2x2048xf32>
    %cst = arith.constant dense<0.000000e+00> : vector<1xf32>
    %12 = vector.multi_reduction <add>, %11, %cst [1, 2] : vector<1x2x2048xf32> to vector<1xf32>
    %13 = vector.shape_cast %12 : vector<1xf32> to vector<1x1x1xf32>
    %14 = vector.extract %13[0, 0, 0] : f32 from vector<1x1x1xf32>
    %15 = arith.addf %10, %14 : f32
    %c0_7 = arith.constant 0 : index
    %16 = memref.load %arg8[%c0_7] : memref<1xf32, #tpu.memory_space<smem>>
    memref.store %15, %arg8[%c0_7] : memref<1xf32, #tpu.memory_space<smem>>
    %c0_i32_8 = arith.constant 0 : i32
    %17 = arith.cmpi eq, %arg0, %c0_i32_8 : i32
    %18 = arith.extui %17 : i1 to i32
    %c0_i32_9 = arith.constant 0 : i32
    %19 = arith.cmpi ne, %18, %c0_i32_9 : i32
    scf.if %19 {
      %c0_10 = arith.constant 0 : index
      %20 = memref.load %arg8[%c0_10] : memref<1xf32, #tpu.memory_space<smem>>
      %cst_11 = arith.constant 4.096000e+03 : f32
      %21 = arith.divf %20, %cst_11 : f32
      %c0_12 = arith.constant 0 : index
      %c0_13 = arith.constant 0 : index
      %22 = vector.load %arg5[%c0_12, %c0_13] : memref<2x32xf32, #tpu.memory_space<vmem>>, vector<2x32xf32>
      %cst_14 = arith.constant 9.99999997E-7 : f32
      %23 = vector.broadcast %cst_14 : f32 to vector<2x32xf32>
      %24 = arith.addf %22, %23 : vector<2x32xf32>
      %cst_15 = arith.constant -1.000000e+01 : f32
      %cst_16 = arith.constant 1.000000e+01 : f32
      %25 = vector.broadcast %cst_15 : f32 to vector<2x32xf32>
      %26 = arith.maximumf %25, %24 : vector<2x32xf32>
      %27 = vector.broadcast %cst_16 : f32 to vector<2x32xf32>
      %28 = arith.minimumf %27, %26 : vector<2x32xf32>
      %c0_17 = arith.constant 0 : index
      %c0_18 = arith.constant 0 : index
      %29 = vector.load %arg4[%c0_17, %c0_18] : memref<2x32xf32, #tpu.memory_space<vmem>>, vector<2x32xf32>
      %cst_19 = arith.constant 1.000000e+00 : f32
      %30 = vector.broadcast %cst_19 : f32 to vector<2x32xf32>
      %31 = arith.addf %30, %28 : vector<2x32xf32>
      %32 = arith.mulf %29, %29 : vector<2x32xf32>
      %33 = arith.subf %31, %32 : vector<2x32xf32>
      %34 = math.exp %28 : vector<2x32xf32>
      %35 = arith.subf %33, %34 : vector<2x32xf32>
      %36 = vector.shape_cast %35 : vector<2x32xf32> to vector<1x2x32xf32>
      %cst_20 = arith.constant dense<0.000000e+00> : vector<1xf32>
      %37 = vector.multi_reduction <add>, %36, %cst_20 [1, 2] : vector<1x2x32xf32> to vector<1xf32>
      %38 = vector.shape_cast %37 : vector<1xf32> to vector<1x1x1xf32>
      %39 = vector.extract %38[0, 0, 0] : f32 from vector<1x1x1xf32>
      %cst_21 = arith.constant -5.000000e-01 : f32
      %40 = arith.mulf %cst_21, %39 : f32
      %cst_22 = arith.constant 2.000000e+00 : f32
      %41 = arith.divf %40, %cst_22 : f32
      %cst_23 = arith.constant 2.000000e+00 : f32
      %42 = arith.divf %41, %cst_23 : f32
      %cst_24 = arith.constant 9.99999997E-7 : f32
      %43 = arith.maximumf %42, %cst_24 : f32
      %c0_25 = arith.constant 0 : index
      %c0_26 = arith.constant 0 : index
      %44 = memref.load %arg7[%c0_25, %c0_26] : memref<1x1xf32, #tpu.memory_space<smem>>
      memref.store %21, %arg7[%c0_25, %c0_26] : memref<1x1xf32, #tpu.memory_space<smem>>
      %cst_27 = arith.constant 1.000000e-01 : f32
      %45 = arith.mulf %cst_27, %43 : f32
      %46 = arith.addf %21, %45 : f32
      %c0_28 = arith.constant 0 : index
      %c0_29 = arith.constant 0 : index
      %47 = memref.load %arg6[%c0_28, %c0_29] : memref<1x1xf32, #tpu.memory_space<smem>>
      memref.store %46, %arg6[%c0_28, %c0_29] : memref<1x1xf32, #tpu.memory_space<smem>>
    } else {
    }
    return
  }
  func.func @transform_0(%arg0: i32) -> (i32, i32) {
    %c0_i32 = arith.constant 0 : i32
    %c0_i32_0 = arith.constant 0 : i32
    return %arg0, %c0_i32 : i32, i32
  }
  func.func @transform_1(%arg0: i32) -> (i32, i32) {
    %c0_i32 = arith.constant 0 : i32
    %c0_i32_0 = arith.constant 0 : i32
    return %arg0, %c0_i32 : i32, i32
  }
  func.func @transform_2(%arg0: i32) -> (i32, i32) {
    %c0_i32 = arith.constant 0 : i32
    %c0_i32_0 = arith.constant 0 : i32
    %c0_i32_1 = arith.constant 0 : i32
    return %c0_i32, %c0_i32_0 : i32, i32
  }
  func.func @transform_3(%arg0: i32) -> (i32, i32) {
    %c0_i32 = arith.constant 0 : i32
    %c0_i32_0 = arith.constant 0 : i32
    %c0_i32_1 = arith.constant 0 : i32
    return %c0_i32, %c0_i32_0 : i32, i32
  }
  func.func @transform_4(%arg0: i32) -> (i32, i32) {
    %c0_i32 = arith.constant 0 : i32
    %c0_i32_0 = arith.constant 0 : i32
    %c0_i32_1 = arith.constant 0 : i32
    return %c0_i32, %c0_i32_0 : i32, i32
  }
  func.func @transform_5(%arg0: i32) -> (i32, i32) {
    %c0_i32 = arith.constant 0 : i32
    %c0_i32_0 = arith.constant 0 : i32
    %c0_i32_1 = arith.constant 0 : i32
    return %c0_i32, %c0_i32_0 : i32, i32
  }
  func.func @transform_6(%arg0: i32) -> (i32, i32) {
    %c0_i32 = arith.constant 0 : i32
    %c0_i32_0 = arith.constant 0 : i32
    %c0_i32_1 = arith.constant 0 : i32
    return %c0_i32, %c0_i32_0 : i32, i32
  }
}

</mosaic_0001>

<bundles_post_ra>
// kernel: tpu_custom_call.1
= control target key start
LH: loop header
LB: loop body
LE: loop exit
PB: predicated region body
PF: predicated region fallthrough
CT: control target
= control target key end

     0   :  { %12 = vsyncpa [#allocation4], 0  ;;  %s623_s0 = inlined_call_operand.hbm [shape: f32[2,2048], index: 0, kind: input, shape index: {}]   ;;  %s624_s1 = inlined_call_operand.hbm [shape: f32[2,2048], index: 1, kind: input, shape index: {}]   ;;  %s625_s2 = inlined_call_operand.hbm [shape: f32[1,2048], index: 2, kind: input, shape index: {}]   ;;  %s626_s3 = inlined_call_operand.vmem [shape: f32[2,32], index: 3, kind: input, shape index: {}]   ;;  %s627_s4 = inlined_call_operand.vmem [shape: f32[2,32], index: 4, kind: input, shape index: {}]   ;;  %s628_s5 = inlined_call_operand.hbm [shape: f32[1,1], index: 5, kind: output, shape index: {0}]   ;;  %s629_s6 = inlined_call_operand.hbm [shape: f32[1,1], index: 6, kind: output, shape index: {1}]  }
   0x1   :  { %13 = vsyncpa [#allocation7], 0 }
   0x2   :  { %14 = vsyncpa [#allocation5], 0 }
   0x3   :  { %15 = vsyncpa [#allocation11], 0  ;;  %s526_s21 = smov [#allocation6]   ;;  %s527_s23 = smov [#allocation3]  }
   0x4   :  { %s32_s22 = sshll.u32 %s526_s21, 4  ;;  %s22_s24 = sshll.u32 %s527_s23, 4  ;;  %s33_s22 = int_to_ptr.vmem [resolvable:$true] %s32_s22  ;;  %s23_s24 = int_to_ptr.vmem [resolvable:$true] %s22_s24 }
   0x5   :  { %s450_s25 = scalar_lea.vmem %s33_s22, 512  ;;  %p455_p1 = scmp.lt.s32.totalorder %s33_s22, %s33_s22 }
   0x6   :  { %p451_p0 = scmp.ne.s32.totalorder %s33_s22, %s450_s25  ;;  %p456_p2 = scmp.lt.s32.totalorder %s450_s25, %s450_s25 }
   0x8   :  { %p457_p3 = por %p456_p2, %p455_p1 }
   0xa   :  { %p458_p4 = pnand %p457_p3, %p451_p0 }
   0xc   :  { %461 = shalt.err (!%p458_p4)
}
   0xd   :  { %35 = dma.hbm_to_vmem [thread:$0]  %s624_s1, 512, %s33_s22, [#allocation7]  }
   0xe   :  { %s470_s28 = scalar_lea.vmem %s23_s24, 512  ;;  %p475_p6 = scmp.lt.s32.totalorder %s23_s24, %s23_s24 }
   0xf   :  { %p471_p5 = scmp.ne.s32.totalorder %s23_s24, %s470_s28  ;;  %p476_p7 = scmp.lt.s32.totalorder %s470_s28, %s470_s28 }
  0x11   :  { %p477_p8 = por %p476_p7, %p475_p6 }
  0x13   :  { %p478_p9 = pnand %p477_p8, %p471_p5 }
  0x15   :  { %481 = shalt.err (!%p478_p9)
}
  0x16   :  { %25 = dma.hbm_to_vmem [thread:$0]  %s623_s0, 512, %s23_s24, [#allocation4]  }
  0x17   :  { %s528_s7 = smov [#allocation8]  }
  0x18   :  { %s42_s8 = sshll.u32 %s528_s7, 4  ;;  %s43_s8 = int_to_ptr.vmem [resolvable:$true] %s42_s8 }
  0x19   :  { %s490_s9 = scalar_lea.vmem %s43_s8, 256  ;;  %p495_p11 = scmp.lt.s32.totalorder %s43_s8, %s43_s8 }
  0x1a   :  { %p491_p10 = scmp.ne.s32.totalorder %s43_s8, %s490_s9  ;;  %p496_p12 = scmp.lt.s32.totalorder %s490_s9, %s490_s9 }
  0x1c   :  { %p497_p13 = por %p496_p12, %p495_p11 }
  0x1e   :  { %p498_p0 = pnand %p497_p13, %p491_p10 }
  0x20   :  { %501 = shalt.err (!%p498_p0)
}
  0x21   :  { %45 = dma.hbm_to_vmem [thread:$0]  %s625_s2, 256, %s43_s8, [#allocation7]  }
  0x22   :  { %518 = dma.done.wait [#allocation4], 512  }
  0x23   :  { %519 = vsyncadd [#allocation4], 4294966784 }
  0x24   :  { %520 = dma.done.wait [#allocation7], 768  }
  0x25   :  { %521 = vsyncadd [#allocation7], 4294966528  ;;  %v85_v0 = vlaneseq  ;;  %v529_v2 = vmov 1983009808   ;;  %v65_v11 = vld [vmem:[#allocation3] sm:$0xff]  ;;  %v66_v15 = vld [vmem:[#allocation3 + $0x8] sm:$0xff] }
  0x26   :  { %v152_v3 = vunpack.c.l.s4 %v529_v2  ;;  %v81_v12 = vld [vmem:[#allocation8] sm:$0xff]  ;;  %v70_v17 = vld [vmem:[#allocation6 + $0x8] sm:$0xff]  ;;  %v67_v46 = vld [vmem:[#allocation3 + $0x10] sm:$0xff]  ;;  %vm314_vm0 = vcmask 1041408   ;;  %vm376_vm1 = vcmask 254976   ;;  %s530_s15 = smov [#allocation10]  }
  0x27   :  { %v86_v1 = vshrl.u32 %v85_v0, 7  ;;  %v69_v16 = vld [vmem:[#allocation6] sm:$0xff]  ;;  %v82_v18 = vld [vmem:[#allocation8 + $0x8] sm:$0xff]  ;;  %v74_v27 = vsub.f32 %v66_v15, %v70_v17  ;;  %v71_v47 = vld [vmem:[#allocation6 + $0x10] sm:$0xff]  ;;  %s531_s20 = smov 1e-06  }
  0x28   :  { %v153_v10 = vunpack.c.0.s8 %v152_v3  ;;  %v73_v26 = vsub.f32 %v65_v11, %v69_v16  ;;  %v75_v55 = vsub.f32 %v67_v46, %v71_v47  ;;  %v68_v2 = vld [vmem:[#allocation3 + $0x18] sm:$0xff]  ;;  %s532_s24 = smov [#allocation9]  }
  0x29   :  { %v87_v4 = vsub.s32 0, %v86_v1  ;;  %v91_v5 = vsub.s32 1, %v86_v1  ;;  %v95_v6 = vsub.s32 2, %v86_v1  ;;  %v99_v7 = vsub.s32 3, %v86_v1  ;;  %v72_v3 = vld [vmem:[#allocation6 + $0x18] sm:$0xff] }
  0x2a   :  { %v103_v8 = vsub.s32 4, %v86_v1  ;;  %v107_v9 = vsub.s32 5, %v86_v1  ;;  %v111_v13 = vsub.s32 6, %v86_v1  ;;  %v115_v14 = vsub.s32 7, %v86_v1 }
  0x2b   :  { %v88_v19 = vrot.slane %v81_v12, %v87_v4  ;;  %v92_v20 = vrot.slane %v81_v12, %v91_v5  ;;  %v96_v21 = vrot.slane %v81_v12, %v95_v6  ;;  %v100_v22 = vrot.slane %v81_v12, %v99_v7 }
  0x2c   :  { %v104_v23 = vrot.slane %v81_v12, %v103_v8  ;;  %v108_v24 = vrot.slane %v81_v12, %v107_v9  ;;  %v577_v25 = vsub.s32 %v153_v10, %v86_v1  ;;  %v112_v28 = vrot.slane %v81_v12, %v111_v13  ;;  %v365_v1 = vld [vmem:[%s627_s4] sm:$0x3] }
  0x2d   :  { %v116_v29 = vrot.slane %v81_v12, %v115_v14  ;;  %v120_v30 = vrot.slane %v82_v18, %v87_v4  ;;  %v124_v31 = vrot.slane %v82_v18, %v91_v5  ;;  %v128_v32 = vrot.slane %v82_v18, %v95_v6 }
  0x2e   :  { %v132_v33 = vrot.slane %v82_v18, %v99_v7  ;;  %v149_v34 = vcombine.low %v88_v19, %v92_v20  ;;  %v150_v35 = vcombine.low %v96_v21, %v100_v22  ;;  %v166_v36 = vcombine.low %v104_v23, %v108_v24 }
  0x2f   :  { %v167_v37 = vcombine.low %v112_v28, %v116_v29  ;;  %v77_v38 = vmul.f32 %v73_v26, %v73_v26  ;;  %v78_v39 = vmul.f32 %v74_v27, %v74_v27  ;;  %v183_v44 = vcombine.low %v120_v30, %v124_v31 }
  0x30   :  { %v157_v40 = vrot.slane %v149_v34, %v577_v25  ;;  %v164_v41 = vrot.slane %v150_v35, %v577_v25  ;;  %v174_v42 = vrot.slane %v166_v36, %v577_v25  ;;  %v184_v45 = vcombine.low %v128_v32, %v132_v33 }
  0x31   :  { %v181_v43 = vrot.slane %v167_v37, %v577_v25  ;;  %v136_v49 = vrot.slane %v82_v18, %v103_v8  ;;  %v140_v51 = vrot.slane %v82_v18, %v107_v9  ;;  %v144_v52 = vrot.slane %v82_v18, %v111_v13 }
  0x32   :  { %v165_v48 = vcombine.low %v157_v40, %v164_v41  ;;  %v148_v53 = vrot.slane %v82_v18, %v115_v14  ;;  %v191_v56 = vrot.slane %v183_v44, %v577_v25  ;;  %v198_v57 = vrot.slane %v184_v45, %v577_v25 }
  0x33   :  { %v182_v50 = vcombine.low %v174_v42, %v181_v43  ;;  %v200_v61 = vcombine.low %v136_v49, %v140_v51  ;;  %v79_v4 = vmul.f32 %v75_v55, %v75_v55  ;;  %v366_v12 = vadd.f32 1e-06, %v365_v1 }
  0x34   :  { %v221_v54 = vmul.f32 %v165_v48, %v77_v38  ;;  %v201_v62 = vcombine.low %v144_v52, %v148_v53  ;;  %v199_v5 = vcombine.low %v191_v56, %v198_v57  ;;  %v76_v13 = vsub.f32 %v68_v2, %v72_v3 }
  0x35   :  { %v222_v58 = vmul.f32 %v182_v50, %v78_v39  ;;  %v208_v14 = vrot.slane %v200_v61, %v577_v25  ;;  %v428_v23 = vclamps-f32 %v366_v12, 10.0  ;;  %v369_v50 = vld [vmem:[%s626_s3] sm:$0x3] }
  0x36   :  { %v230_v59 = vcombine.high %v221_v54, %v221_v54  ;;  %v237_v60 = vrot.slane %v221_v54, %v577_v25  ;;  %v215_v15 = vrot.slane %v201_v62, %v577_v25  ;;  %v223_v17 = vmul.f32 %v199_v5, %v79_v4 }
  0x37   :  { %v247_v6 = vcombine.high %v222_v58, %v222_v58  ;;  %v254_v7 = vrot.slane %v222_v58, %v577_v25  ;;  %v80_v24 = vmul.f32 %v76_v13, %v76_v13  ;;  %v373_v34 = vmul.f32 1.442695, %v428_v23 }
  0x38   :  { %v244_v63 = vrot.slane %v230_v59, %v577_v25  ;;  %v245_v0 = vcombine.high %v237_v60, %v237_v60  ;;  %v315_v9 = vsel %vm314_vm0, %v237_v60, 0.0  ;;  %v216_v26 = vcombine.low %v208_v14, %v215_v15 }
  0x39   :  { %v261_v18 = vrot.slane %v247_v6, %v577_v25  ;;  %v262_v19 = vcombine.high %v254_v7, %v254_v7  ;;  %v322_v22 = vsel %vm314_vm0, %v254_v7, 0.0  ;;  %v264_v29 = vcombine.high %v223_v17, %v223_v17 }
  0x3a   :  { %v246_v8 = vcombine.high %v244_v63, %v244_v63  ;;  %v316_v10 = vsel %vm314_vm0, %v245_v0, 0.0  ;;  %v318_v11 = vsel %vm314_vm0, %v244_v63, 0.0  ;;  %v271_v30 = vrot.slane %v223_v17, %v577_v25 }
  0x3b   :  { %v317_v16 = vadd.f32 %v316_v10, %v315_v9  ;;  %v263_v28 = vcombine.high %v261_v18, %v261_v18  ;;  %v324_v31 = vsel %vm314_vm0, %v262_v19, 0.0  ;;  %v326_v33 = vsel %vm314_vm0, %v261_v18, 0.0 }
  0x3c   :  { %v320_v20 = vsel %vm314_vm0, %v246_v8, 0.0  ;;  %v224_v36 = vmul.f32 %v216_v26, %v80_v24  ;;  %v278_v37 = vrot.slane %v264_v29, %v577_v25  ;;  %v279_v38 = vcombine.high %v271_v30, %v271_v30 }
  0x3d   :  { %v319_v21 = vadd.f32 %v318_v11, %v317_v16  ;;  %v328_v39 = vsel %vm314_vm0, %v263_v28, 0.0  ;;  %v330_v41 = vsel %vm314_vm0, %v271_v30, 0.0  ;;  %440 = vpow2.f32 %v373_v34 }
  0x3e   :  { %v280_v43 = vcombine.high %v278_v37, %v278_v37  ;;  %v281_v44 = vcombine.high %v224_v36, %v224_v36  ;;  %v288_v45 = vrot.slane %v224_v36, %v577_v25  ;;  %v332_v46 = vsel %vm314_vm0, %v279_v38, 0.0 }
  0x3f   :  { %v321_v27 = vadd.f32 %v320_v20, %v319_v21  ;;  %v334_v48 = vsel %vm314_vm0, %v278_v37, 0.0  ;;  %v370_v56 = vadd.f32 1.0, %v428_v23  ;;  %v371_v57 = vmul.f32 %v369_v50, %v369_v50 }
  0x40   :  { %v295_v51 = vrot.slane %v281_v44, %v577_v25  ;;  %v296_v52 = vcombine.high %v288_v45, %v288_v45  ;;  %v336_v53 = vsel %vm314_vm0, %v280_v43, 0.0  ;;  %v338_v55 = vsel %vm314_vm0, %v288_v45, 0.0 }
  0x41   :  { %v323_v32 = vadd.f32 %v322_v22, %v321_v27  ;;  %v372_v63 = vsub.f32 %v370_v56, %v371_v57 }
  0x42   :  { %v297_v59 = vcombine.high %v295_v51, %v295_v51  ;;  %v340_v60 = vsel %vm314_vm0, %v296_v52, 0.0  ;;  %v342_v62 = vsel %vm314_vm0, %v295_v51, 0.0 }
  0x43   :  { %v325_v35 = vadd.f32 %v324_v31, %v323_v32 }
  0x44   :  { %v344_v25 = vsel %vm314_vm0, %v297_v59, 0.0 }
  0x45   :  { %v327_v40 = vadd.f32 %v326_v33, %v325_v35 }
  0x47   :  { %v329_v42 = vadd.f32 %v328_v39, %v327_v40 }
  0x49   :  { %v331_v47 = vadd.f32 %v330_v41, %v329_v42 }
  0x4a   :  { %v441_v0 = vpop.eup %440 }
  0x4b   :  { %v333_v49 = vadd.f32 %v332_v46, %v331_v47  ;;  %v375_v3 = vsub.f32 %v372_v63, %v441_v0 }
  0x4d   :  { %v335_v54 = vadd.f32 %v334_v48, %v333_v49  ;;  %v377_v5 = vsel %vm376_vm1, %v375_v3, 0.0 }
  0x4f   :  { %v337_v58 = vadd.f32 %v336_v53, %v335_v54 }
  0x51   :  { %v339_v61 = vadd.f32 %v338_v55, %v337_v58 }
  0x53   :  { %v341_v1 = vadd.f32 %v340_v60, %v339_v61 }
  0x55   :  { %v343_v2 = vadd.f32 %v342_v62, %v341_v1 }
  0x57   :  { %v345_v4 = vadd.f32 %v344_v25, %v343_v2 }
  0x59   :  { %346 = vadd.xlane.f32.xlu0 %v345_v4 }
  0x5d   :  { %378 = vadd.xlane.f32.xlu0 %v377_v5 }
  0xe2   :  { %v347_v6 = vpop.xlane.xlu0 %346 }
  0xe3   :  { %v348_v7 = vrot.slane %v347_v6, 4 }
  0xe5   :  { %v349_v8 = vadd.f32 %v348_v7, %v347_v6 }
  0xe6   :  { %v379_v9 = vpop.xlane.xlu0 %378 }
  0xe7   :  { %v350_v10 = vrot.slane %v349_v8, 2  ;;  %v380_v11 = vrot.slane %v379_v9, 4 }
  0xe9   :  { %v381_v12 = vadd.f32 %v380_v11, %v379_v9  ;;  %v351_v13 = vadd.f32 %v350_v10, %v349_v8 }
  0xeb   :  { %v382_v14 = vrot.slane %v381_v12, 2  ;;  %v352_v15 = vrot.slane %v351_v13, 1 }
  0xed   :  { %v383_v16 = vadd.f32 %v382_v14, %v381_v12  ;;  %v353_v17 = vadd.f32 %v352_v15, %v351_v13 }
  0xef   :  { %429 = vpush %v353_v17  ;;  %v384_v18 = vrot.slane %v383_v16, 1 }
  0xf1   :  { %v385_v19 = vadd.f32 %v384_v18, %v383_v16 }
  0xf3   :  { %431 = vpush %v385_v19 }
 0x120   :  { %s430_s3 = spop %429 }
 0x121   :  { %s364_s12 = smul.f32 0.00024414063, %s430_s3 }
 0x123   :  { %396 = sst [smem:[#allocation10]] %s364_s12 }
 0x124   :  { %s432_s13 = spop %431 }
 0x125   :  { %s387_s14 = smul.f32 -0.5, %s432_s13 }
 0x126   :  { %416 = dma.smem_to_hbm %s530_s15, 16, %s629_s6, [#allocation11]  }
 0x127   :  { %s390_s18 = smul.f32 0.5, %s387_s14 }
 0x129   :  { %s393_s19 = smul.f32 0.5, %s390_s18 }
 0x12b   :  { %s394_s21 = smax.f32 %s531_s20, %s393_s19 }
 0x12c   :  { %s397_s22 = smul.f32 0.1, %s394_s21 }
 0x12e   :  { %s398_s23 = sadd.f32 %s397_s22, %s364_s12 }
 0x130   :  { %400 = sst [smem:[#allocation9]] %s398_s23 }
 0x131   :  { %408 = dma.smem_to_hbm %s532_s24, 16, %s628_s5, [#allocation5]  }
 0x132   :  { %522 = dma.done.wait [#allocation5], 16  }
 0x133   :  { %523 = vsyncadd [#allocation5], 4294967280 }
 0x134   :  { %524 = dma.done.wait [#allocation11], 16  }
 0x135   :  { %525 = vsyncadd [#allocation11], 4294967280 }
 0x136   :  { %423 = sfence }
 0x137   :  { %424 = vsyncpa [#allocation4], 1 }
 0x138   :  { %425 = vsyncpa [#allocation7], 1 }
 0x139   :  { %426 = vsyncpa [#allocation5], 1 }
 0x13a   :  { %427 = vsyncpa [#allocation11], 1 }

</bundles_post_ra>
